<compile_context>
chip_gen: v7x
topology: tpu7x:2x2x1
jax: 0.10.0
libtpu: 0.0.40
codegen_flags: <defaults>
</compile_context>

<pallas_src>
import functools
import math

import jax
import jax.numpy as jnp
from jax import lax
from jax.experimental import pallas as pl
from jax.experimental.pallas import tpu as pltpu


def _vmem_limit_bytes():
    # Generation-aware scoped-VMEM budget (64 MiB on v7x, 128 MiB on v5e/v6e).
    cap = 64 * 1024 * 1024
    try:
        cap = int(pltpu.get_tpu_info().vmem_capacity_bytes)
    except Exception:
        pass
    return int(min(cap * 3 // 4, 48 * 1024 * 1024))


def _compiler_params(n_axes):
    return pltpu.CompilerParams(
        dimension_semantics=("parallel",) * n_axes,
        vmem_limit_bytes=_vmem_limit_bytes())


def _nt_dot(a, b):
    """a @ b.T on the MXU without materializing the transpose."""
    return lax.dot_general(a, b, (((1,), (1,)), ((), ())),
                           preferred_element_type=jnp.float32)


# ---------------------------------------------------------------------------
# Kernel 1: QKV + relative scores + attention + fc_out + residual + BN1 partials
#   grid = (N, H); each step handles one (batch, head) slab of L rows.
# ---------------------------------------------------------------------------
def _attn_block_kernel(x_ref, wqkv_ref, bqkv_ref, erev_ref, wo_ref, bo_ref,
                       y1_ref, st1_ref, *, scale, embed_size, seq_len):
    E, L = embed_size, seq_len
    x = x_ref[0]                                               # (L, E)

    # fused q/k/v projection: one lane-dense (L, 3E) MXU result
    qkv = jnp.dot(x, wqkv_ref[...],
                  preferred_element_type=jnp.float32) + bqkv_ref[...]
    q = qkv[:, 0:E]
    k = qkv[:, E:2 * E]
    v = qkv[:, 2 * E:3 * E]

    # scores + the (faithful) masked_fill(triu(ones,1)==0, -1e20), then scale
    scores = _nt_dot(q, k)                                     # (L, L)
    row = lax.broadcasted_iota(jnp.int32, (L, L), 0)
    col = lax.broadcasted_iota(jnp.int32, (L, L), 1)
    scores = jnp.where(col > row, scores, jnp.float32(-1e20)) * scale

    m = jnp.max(scores, axis=-1, keepdims=True)
    e = jnp.exp(scores - m)
    p = e * pl.reciprocal(jnp.sum(e, axis=-1, keepdims=True), approx=True)

    # relative-position scores:  S[i, c] = q[i] . E[L-1-(i-c)]  for i >= c, else 0
    # qerev[i, d] = q[i] . E[L-1-d]  (E pre-flipped in the wrapper)
    qerev = _nt_dot(q, erev_ref[0])                            # (L, L)
    reldist = row - col
    s = jnp.zeros((L, L), jnp.float32)
    for d in range(L):                                         # static unroll, tiny VPU work
        s = s + jnp.where(reldist == d, qerev[:, d:d + 1], jnp.float32(0.0))

    attn = p + s
    z = jnp.dot(attn, v, preferred_element_type=jnp.float32)   # (L, E)
    out = (jnp.dot(z, wo_ref[...], preferred_element_type=jnp.float32)
           + bo_ref[...] + x)                                  # fc_out + first residual
    y1_ref[0] = out

    # BN1 partial statistics for this head's L channels
    ps = jnp.sum(out, axis=1, keepdims=True)                   # (L, 1)
    pss = jnp.sum(out * out, axis=1, keepdims=True)
    st1_ref[0] = jnp.concatenate([ps, pss], axis=1)            # (L, 2)


def attention_block(x_hm, wqkv_t, bqkv, erev, wo_t, bo, *, heads, seq_len,
                    embed_size):
    N, C, E = x_hm.shape
    H, L = heads, seq_len
    scale = 1.0 / math.sqrt(embed_size)
    flops = 2 * N * H * L * E * (4 * E + 3 * L)
    cost = pl.CostEstimate(
        flops=flops, transcendentals=N * H * L * L,
        bytes_accessed=4 * (2 * N * C * E + 4 * E * E + H * L * E + 4 * E
                            + 2 * N * C))
    xspec = pl.BlockSpec((1, L, E), lambda b, h: (b, h, 0))
    return pl.pallas_call(
        functools.partial(_attn_block_kernel, scale=scale,
                          embed_size=E, seq_len=L),
        out_shape=[jax.ShapeDtypeStruct((N, C, E), jnp.float32),
                   jax.ShapeDtypeStruct((N, C, 2), jnp.float32)],
        grid_spec=pltpu.PrefetchScalarGridSpec(
            num_scalar_prefetch=0,
            grid=(N, H),
            in_specs=[xspec,
                      pl.BlockSpec((E, 3 * E), lambda b, h: (0, 0)),
                      pl.BlockSpec((1, 3 * E), lambda b, h: (0, 0)),
                      pl.BlockSpec((1, L, E), lambda b, h: (h, 0, 0)),
                      pl.BlockSpec((E, E), lambda b, h: (0, 0)),
                      pl.BlockSpec((1, E), lambda b, h: (0, 0))],
            out_specs=[xspec,
                       pl.BlockSpec((1, L, 2), lambda b, h: (b, h, 0))],
        ),
        compiler_params=_compiler_params(2),
        cost_estimate=cost,
    )(x_hm, wqkv_t, bqkv, erev, wo_t, bo)


# ---------------------------------------------------------------------------
# Kernel 2: BN1-apply + FFN (Linear -> LeakyReLU -> Linear) + residual + BN2 partials
# ---------------------------------------------------------------------------
def _bn_ffn_kernel(y1_ref, sc1_ref, sh1_ref, w1_ref, b1_ref, w2_ref, b2_ref,
                   y2_ref, st2_ref):
    y1 = y1_ref[0]                                             # (C, E)
    x1 = y1 * sc1_ref[...] + sh1_ref[...]                      # BN1 apply
    h = jnp.dot(x1, w1_ref[...],
                preferred_element_type=jnp.float32) + b1_ref[...]
    h = jnp.where(h > 0, h, 0.01 * h)                          # LeakyReLU(0.01)
    ff = jnp.dot(h, w2_ref[...],
                 preferred_element_type=jnp.float32) + b2_ref[...]
    y2 = ff + x1                                               # second residual
    y2_ref[0] = y2
    ps = jnp.sum(y2, axis=1, keepdims=True)
    pss = jnp.sum(y2 * y2, axis=1, keepdims=True)
    st2_ref[0] = jnp.concatenate([ps, pss], axis=1)


def bn_ffn_block(y1, scale1, shift1, w1_t, b1, w2_t, b2):
    N, C, E = y1.shape
    Hd = w1_t.shape[1]
    cost = pl.CostEstimate(
        flops=4 * N * C * E * Hd, transcendentals=0,
        bytes_accessed=4 * (2 * N * C * E + 2 * E * Hd + Hd + E + 2 * C
                            + 2 * N * C))
    row = pl.BlockSpec((1, C, E), lambda b: (b, 0, 0))
    cvec = pl.BlockSpec((C, 1), lambda b: (0, 0))
    return pl.pallas_call(
        _bn_ffn_kernel,
        out_shape=[jax.ShapeDtypeStruct((N, C, E), jnp.float32),
                   jax.ShapeDtypeStruct((N, C, 2), jnp.float32)],
        grid_spec=pltpu.PrefetchScalarGridSpec(
            num_scalar_prefetch=0,
            grid=(N,),
            in_specs=[row, cvec, cvec,
                      pl.BlockSpec((E, Hd), lambda b: (0, 0)),
                      pl.BlockSpec((1, Hd), lambda b: (0, 0)),
                      pl.BlockSpec((Hd, E), lambda b: (0, 0)),
                      pl.BlockSpec((1, E), lambda b: (0, 0))],
            out_specs=[row, pl.BlockSpec((1, C, 2), lambda b: (b, 0, 0))],
        ),
        compiler_params=_compiler_params(1),
        cost_estimate=cost,
    )(y1, scale1, shift1, w1_t, b1, w2_t, b2)


# ---------------------------------------------------------------------------
# Kernel 3: BN2-apply (per-channel affine)
# ---------------------------------------------------------------------------
def _bn_apply_kernel(y_ref, sc_ref, sh_ref, o_ref):
    o_ref[0] = y_ref[0] * sc_ref[...] + sh_ref[...]


def bn_apply(y, scale, shift):
    N, C, E = y.shape
    row = pl.BlockSpec((1, C, E), lambda b: (b, 0, 0))
    cvec = pl.BlockSpec((C, 1), lambda b: (0, 0))
    return pl.pallas_call(
        _bn_apply_kernel,
        out_shape=jax.ShapeDtypeStruct((N, C, E), jnp.float32),
        grid_spec=pltpu.PrefetchScalarGridSpec(
            num_scalar_prefetch=0, grid=(N,),
            in_specs=[row, cvec, cvec],
            out_specs=row),
        compiler_params=_compiler_params(1),
        cost_estimate=pl.CostEstimate(
            flops=2 * N * C * E, transcendentals=0,
            bytes_accessed=4 * (2 * N * C * E + 2 * C)),
    )(y, scale, shift)


# ---------------------------------------------------------------------------
# Tiny cross-batch BN statistics fold (runs in XLA between pallas_calls)
# ---------------------------------------------------------------------------
def _bn_affine(stats, gamma_hm, beta_hm, count, eps=1e-5):
    # stats: (N, C, 2) per-channel partial [sum, sumsq] in head-major order.
    tot = jnp.sum(stats, axis=0)                               # (C, 2)
    mean = tot[:, 0] / count
    var = tot[:, 1] / count - mean * mean                      # biased, like PyTorch BN
    rstd = lax.rsqrt(var + eps)
    scale = gamma_hm * rstd
    shift = beta_hm - mean * scale
    C = stats.shape[1]
    return scale.reshape(C, 1), shift.reshape(C, 1)


# ---------------------------------------------------------------------------
# EncoderLayer forward ('temporal'/'spatial' STTRE layout: x is (N, L*H, E))
# ---------------------------------------------------------------------------
def encoder_layer_forward(x, p, *, heads, seq_len, embed_size, rel_emb=True):
    n, c, e = x.shape
    H, L, E = heads, seq_len, embed_size
    assert c == L * H and e == E
    assert L % 8 == 0 or H == 1, "per-head row tile must be sublane aligned"
    x = x.astype(jnp.float32)

    # ---- loop-invariant prep, hoisted out of the kernels -------------------
    wqkv_t = jnp.concatenate([p['wq'].T, p['wk'].T, p['wv'].T], axis=1)  # (E, 3E)
    bqkv = jnp.concatenate([p['bq'], p['bk'], p['bv']]).reshape(1, 3 * E)
    wo_t, bo = p['wo'].T, p['bo'].reshape(1, E)
    w1_t, b1 = p['w1'].T, p['b1'].reshape(1, -1)
    w2_t, b2 = p['w2'].T, p['b2'].reshape(1, E)
    if rel_emb:
        erev = jnp.flip(p['E'].astype(jnp.float32), axis=1)              # (H, L, E)
    else:
        erev = jnp.zeros((H, L, E), jnp.float32)

    def to_hmajor(v):  # per-channel (C,) vector, c = l*H + h  ->  head-major order
        return v.reshape(L, H).T.reshape(c)

    g1_hm, be1_hm = to_hmajor(p['g1']), to_hmajor(p['be1'])
    g2_hm, be2_hm = to_hmajor(p['g2']), to_hmajor(p['be2'])

    # One small head-major permutation of x (replaces the previous q/k/v head-split,
    # z merge and 2x BatchNorm transposes -- everything downstream runs in this order).
    # TODO(synk): a stride-H row BlockSpec would remove this too, but sub-8 sublane
    # blocks are not expressible, so one tiny XLA transpose in and one out remain.
    x_hm = x.reshape(n, L, H, E).transpose(0, 2, 1, 3).reshape(n, c, E)

    y1, stats1 = attention_block(x_hm, wqkv_t, bqkv, erev, wo_t, bo,
                                 heads=H, seq_len=L, embed_size=E)

    # TODO(synk): BatchNorm running_mean/running_var state updates are not modeled.
    scale1, shift1 = _bn_affine(stats1, g1_hm, be1_hm, n * E)
    y2, stats2 = bn_ffn_block(y1, scale1, shift1, w1_t, b1, w2_t, b2)

    scale2, shift2 = _bn_affine(stats2, g2_hm, be2_hm, n * E)
    out_hm = bn_apply(y2, scale2, shift2)

    # back to the module's (N, L*H, E) channel order
    return out_hm.reshape(n, H, L, E).transpose(0, 2, 1, 3).reshape(n, c, E)


# ---------------------------------------------------------------------------
# Plain-JAX reference mirroring the PyTorch forward exactly
# ---------------------------------------------------------------------------
def encoder_layer_ref(x, p, *, heads, seq_len, embed_size, rel_emb=True):
    n, c, _ = x.shape
    v = x @ p['wv'].T + p['bv']
    k = x @ p['wk'].T + p['bk']
    q = x @ p['wq'].T + p['bq']
    v = v.reshape(n, seq_len, heads, embed_size)
    k = k.reshape(n, seq_len, heads, embed_size)
    q = q.reshape(n, seq_len, heads, embed_size)

    L = seq_len
    if rel_emb:
        qe = jnp.einsum('nlhe,hke->nhlk', q, p['E'])
        m = jnp.flip(jnp.triu(jnp.ones((L, L), jnp.float32), 1), axis=1)
        qe = jnp.where(m == 1.0, 0.0, qe)
        padded = jnp.pad(qe, ((0, 0), (0, 0), (0, 0), (1, 0)))
        s = padded.reshape(n, heads, L + 1, L)[:, :, 1:, :]
    else:
        s = 0.0

    qk = jnp.einsum('nqhd,nkhd->nhqk', q, k)
    mask = jnp.triu(jnp.ones((L, L), jnp.float32), 1)
    qk = jnp.where(mask == 0, -1e20, qk)
    attention = jax.nn.softmax(qk / embed_size ** 0.5, axis=3) + s
    z = jnp.einsum('nhql,nlhd->nqhd', attention, v).reshape(n, c, embed_size)
    z = z @ p['wo'].T + p['bo']

    def bn(t, g, b):
        mean = jnp.mean(t, axis=(0, 2), keepdims=True)
        var = jnp.mean((t - mean) ** 2, axis=(0, 2), keepdims=True)
        return (t - mean) / jnp.sqrt(var + 1e-5) * g[None, :, None] + b[None, :, None]

    x1 = bn(z + x, p['g1'], p['be1'])
    h = x1 @ p['w1'].T + p['b1']
    h = jnp.where(h > 0, h, 0.01 * h)
    ff = h @ p['w2'].T + p['b2']
    return bn(ff + x1, p['g2'], p['be2'])


if __name__ == "__main__":
    embed_size, heads, seq_len, forward_expansion = 32, 4, 8, 2
    batch = 2
    C = seq_len * heads                                        # 'temporal' module layout

    key = jax.random.PRNGKey(0)
    keys = jax.random.split(key, 16)

    def nrm(k, shape, scale=0.1):
        return scale * jax.random.normal(k, shape, jnp.float32)

    p = {
        'wq': nrm(keys[0], (embed_size, embed_size)),
        'bq': nrm(keys[1], (embed_size,)),
        'wk': nrm(keys[2], (embed_size, embed_size)),
        'bk': nrm(keys[3], (embed_size,)),
        'wv': nrm(keys[4], (embed_size, embed_size)),
        'bv': nrm(keys[5], (embed_size,)),
        'E': jax.random.normal(keys[6], (heads, seq_len, embed_size), jnp.float32),
        'wo': nrm(keys[7], (embed_size, embed_size)),
        'bo': nrm(keys[8], (embed_size,)),
        'g1': jnp.ones((C,), jnp.float32),
        'be1': jnp.zeros((C,), jnp.float32),
        'w1': nrm(keys[9], (forward_expansion * embed_size, embed_size)),
        'b1': nrm(keys[10], (forward_expansion * embed_size,)),
        'w2': nrm(keys[11], (embed_size, forward_expansion * embed_size)),
        'b2': nrm(keys[12], (embed_size,)),
        'g2': jnp.ones((C,), jnp.float32),
        'be2': jnp.zeros((C,), jnp.float32),
    }

    x = jax.random.normal(keys[13], (batch, C, embed_size), jnp.float32)

    out = encoder_layer_forward(x, p, heads=heads, seq_len=seq_len,
                                embed_size=embed_size, rel_emb=True)
    out = jax.block_until_ready(out)

    ref = encoder_layer_ref(x, p, heads=heads, seq_len=seq_len,
                            embed_size=embed_size, rel_emb=True)
    assert out.shape == (batch, C, embed_size)
    max_err = float(jnp.max(jnp.abs(out - ref)))
    assert jnp.allclose(out, ref, atol=2e-3, rtol=2e-3), f"mismatch: {max_err}"

    print("KERNEL_OK")
</pallas_src>

<mosaic_0001>
module attributes {stable_mosaic.version = 11 : i64} {
  func.func @_attn_block_kernel(%arg0: i32, %arg1: i32, %arg2: memref<1x8x32xf32, #tpu.memory_space<vmem>>, %arg3: memref<32x96xf32, #tpu.memory_space<vmem>>, %arg4: memref<1x96xf32, #tpu.memory_space<vmem>>, %arg5: memref<1x8x32xf32, #tpu.memory_space<vmem>>, %arg6: memref<32x32xf32, #tpu.memory_space<vmem>>, %arg7: memref<1x32xf32, #tpu.memory_space<vmem>>, %arg8: memref<1x8x32xf32, #tpu.memory_space<vmem>>, %arg9: memref<1x8x2xf32, #tpu.memory_space<vmem>>) attributes {dimension_semantics = [#tpu.dimension_semantics<parallel>, #tpu.dimension_semantics<parallel>], iteration_bounds = array<i64: 2, 4>, scalar_prefetch = 0 : i64, scratch_operands = 0 : i64, tpu.core_type = #tpu.core_type<tc>, window_params = [{transform_indices = @transform_0, window_bounds = array<i64: 1, 8, 32>}, {pipeline_mode = #tpu.pipeline_mode<synchronous>, transform_indices = @transform_1, window_bounds = array<i64: 32, 96>}, {pipeline_mode = #tpu.pipeline_mode<synchronous>, transform_indices = @transform_2, window_bounds = array<i64: 1, 96>}, {transform_indices = @transform_3, window_bounds = array<i64: 1, 8, 32>}, {pipeline_mode = #tpu.pipeline_mode<synchronous>, transform_indices = @transform_4, window_bounds = array<i64: 32, 32>}, {pipeline_mode = #tpu.pipeline_mode<synchronous>, transform_indices = @transform_5, window_bounds = array<i64: 1, 32>}, {transform_indices = @transform_6, window_bounds = array<i64: 1, 8, 32>}, {transform_indices = @transform_7, window_bounds = array<i64: 1, 8, 2>}]} {
    %c0 = arith.constant 0 : index
    %c0_0 = arith.constant 0 : index
    %c0_1 = arith.constant 0 : index
    %0 = vector.load %arg2[%c0, %c0_0, %c0_1] : memref<1x8x32xf32, #tpu.memory_space<vmem>>, vector<1x8x32xf32>
    %1 = vector.shape_cast %0 : vector<1x8x32xf32> to vector<8x32xf32>
    %c0_2 = arith.constant 0 : index
    %c0_3 = arith.constant 0 : index
    %2 = vector.load %arg3[%c0_2, %c0_3] : memref<32x96xf32, #tpu.memory_space<vmem>>, vector<32x96xf32>
    %cst = arith.constant dense<0.000000e+00> : vector<8x96xf32>
    %3 = tpu.matmul %1, %2, %cst {dimension_numbers = #tpu.dot_dimension_numbers<[1], [0], [0], [1], [0, 0, 1, 1], [], []>} : vector<8x32xf32>, vector<32x96xf32>, vector<8x96xf32> -> vector<8x96xf32>
    %c0_4 = arith.constant 0 : index
    %c0_5 = arith.constant 0 : index
    %4 = vector.load %arg4[%c0_4, %c0_5] : memref<1x96xf32, #tpu.memory_space<vmem>>, vector<1x96xf32>
    %5 = vector.broadcast %4 : vector<1x96xf32> to vector<8x96xf32>
    %6 = arith.addf %3, %5 : vector<8x96xf32>
    %7 = vector.extract_strided_slice %6 {offsets = [0, 0], sizes = [8, 32], strides = [1, 1]} : vector<8x96xf32> to vector<8x32xf32>
    %8 = vector.extract_strided_slice %6 {offsets = [0, 32], sizes = [8, 32], strides = [1, 1]} : vector<8x96xf32> to vector<8x32xf32>
    %9 = vector.extract_strided_slice %6 {offsets = [0, 64], sizes = [8, 32], strides = [1, 1]} : vector<8x96xf32> to vector<8x32xf32>
    %cst_6 = arith.constant dense<0.000000e+00> : vector<8x8xf32>
    %10 = tpu.matmul %7, %8, %cst_6 {dimension_numbers = #tpu.dot_dimension_numbers<[1], [1], [0], [0], [0, 0, 1, 0], [], []>} : vector<8x32xf32>, vector<8x32xf32>, vector<8x8xf32> -> vector<8x8xf32>
    %11 = tpu.iota {dimensions = array<i32: 0>} : vector<8x8xi32>
    %12 = tpu.iota {dimensions = array<i32: 1>} : vector<8x8xi32>
    %13 = arith.cmpi sgt, %12, %11 : vector<8x8xi32>
    %cst_7 = arith.constant -1.000000e+20 : f32
    %14 = vector.broadcast %cst_7 : f32 to vector<8x8xf32>
    %15 = arith.select %13, %10, %14 : vector<8x8xi1>, vector<8x8xf32>
    %cst_8 = arith.constant 0.176776692 : f32
    %16 = vector.broadcast %cst_8 : f32 to vector<8x8xf32>
    %17 = arith.mulf %15, %16 : vector<8x8xf32>
    %cst_9 = arith.constant dense<0xFF800000> : vector<8xf32>
    %18 = vector.multi_reduction <maximumf>, %17, %cst_9 [1] : vector<8x8xf32> to vector<8xf32>
    %19 = vector.shape_cast %18 : vector<8xf32> to vector<8x1xf32>
    %20 = vector.broadcast %19 : vector<8x1xf32> to vector<8x8xf32>
    %21 = arith.subf %17, %20 : vector<8x8xf32>
    %22 = math.exp %21 : vector<8x8xf32>
    %cst_10 = arith.constant dense<0.000000e+00> : vector<8xf32>
    %23 = vector.multi_reduction <add>, %22, %cst_10 [1] : vector<8x8xf32> to vector<8xf32>
    %24 = vector.shape_cast %23 : vector<8xf32> to vector<8x1xf32>
    %25 = tpu.reciprocal %24 {approx = true} : vector<8x1xf32> -> vector<8x1xf32>
    %26 = vector.broadcast %25 : vector<8x1xf32> to vector<8x8xf32>
    %27 = arith.mulf %22, %26 : vector<8x8xf32>
    %c0_11 = arith.constant 0 : index
    %c0_12 = arith.constant 0 : index
    %c0_13 = arith.constant 0 : index
    %28 = vector.load %arg5[%c0_11, %c0_12, %c0_13] : memref<1x8x32xf32, #tpu.memory_space<vmem>>, vector<1x8x32xf32>
    %29 = vector.shape_cast %28 : vector<1x8x32xf32> to vector<8x32xf32>
    %cst_14 = arith.constant dense<0.000000e+00> : vector<8x8xf32>
    %30 = tpu.matmul %7, %29, %cst_14 {dimension_numbers = #tpu.dot_dimension_numbers<[1], [1], [0], [0], [0, 0, 1, 0], [], []>} : vector<8x32xf32>, vector<8x32xf32>, vector<8x8xf32> -> vector<8x8xf32>
    %31 = arith.subi %11, %12 : vector<8x8xi32>
    %cst_15 = arith.constant 0.000000e+00 : f32
    %32 = vector.broadcast %cst_15 : f32 to vector<8x8xf32>
    %c0_i32 = arith.constant 0 : i32
    %33 = vector.broadcast %c0_i32 : i32 to vector<8x8xi32>
    %34 = arith.cmpi eq, %31, %33 : vector<8x8xi32>
    %35 = vector.extract_strided_slice %30 {offsets = [0, 0], sizes = [8, 1], strides = [1, 1]} : vector<8x8xf32> to vector<8x1xf32>
    %cst_16 = arith.constant 0.000000e+00 : f32
    %36 = vector.shape_cast %35 : vector<8x1xf32> to vector<8x1xf32>
    %37 = vector.broadcast %36 : vector<8x1xf32> to vector<8x8xf32>
    %38 = vector.broadcast %cst_16 : f32 to vector<8x8xf32>
    %39 = arith.select %34, %37, %38 : vector<8x8xi1>, vector<8x8xf32>
    %40 = arith.addf %32, %39 : vector<8x8xf32>
    %c1_i32 = arith.constant 1 : i32
    %41 = vector.broadcast %c1_i32 : i32 to vector<8x8xi32>
    %42 = arith.cmpi eq, %31, %41 : vector<8x8xi32>
    %43 = vector.extract_strided_slice %30 {offsets = [0, 1], sizes = [8, 1], strides = [1, 1]} : vector<8x8xf32> to vector<8x1xf32>
    %cst_17 = arith.constant 0.000000e+00 : f32
    %44 = vector.shape_cast %43 : vector<8x1xf32> to vector<8x1xf32>
    %45 = vector.broadcast %44 : vector<8x1xf32> to vector<8x8xf32>
    %46 = vector.broadcast %cst_17 : f32 to vector<8x8xf32>
    %47 = arith.select %42, %45, %46 : vector<8x8xi1>, vector<8x8xf32>
    %48 = arith.addf %40, %47 : vector<8x8xf32>
    %c2_i32 = arith.constant 2 : i32
    %49 = vector.broadcast %c2_i32 : i32 to vector<8x8xi32>
    %50 = arith.cmpi eq, %31, %49 : vector<8x8xi32>
    %51 = vector.extract_strided_slice %30 {offsets = [0, 2], sizes = [8, 1], strides = [1, 1]} : vector<8x8xf32> to vector<8x1xf32>
    %cst_18 = arith.constant 0.000000e+00 : f32
    %52 = vector.shape_cast %51 : vector<8x1xf32> to vector<8x1xf32>
    %53 = vector.broadcast %52 : vector<8x1xf32> to vector<8x8xf32>
    %54 = vector.broadcast %cst_18 : f32 to vector<8x8xf32>
    %55 = arith.select %50, %53, %54 : vector<8x8xi1>, vector<8x8xf32>
    %56 = arith.addf %48, %55 : vector<8x8xf32>
    %c3_i32 = arith.constant 3 : i32
    %57 = vector.broadcast %c3_i32 : i32 to vector<8x8xi32>
    %58 = arith.cmpi eq, %31, %57 : vector<8x8xi32>
    %59 = vector.extract_strided_slice %30 {offsets = [0, 3], sizes = [8, 1], strides = [1, 1]} : vector<8x8xf32> to vector<8x1xf32>
    %cst_19 = arith.constant 0.000000e+00 : f32
    %60 = vector.shape_cast %59 : vector<8x1xf32> to vector<8x1xf32>
    %61 = vector.broadcast %60 : vector<8x1xf32> to vector<8x8xf32>
    %62 = vector.broadcast %cst_19 : f32 to vector<8x8xf32>
    %63 = arith.select %58, %61, %62 : vector<8x8xi1>, vector<8x8xf32>
    %64 = arith.addf %56, %63 : vector<8x8xf32>
    %c4_i32 = arith.constant 4 : i32
    %65 = vector.broadcast %c4_i32 : i32 to vector<8x8xi32>
    %66 = arith.cmpi eq, %31, %65 : vector<8x8xi32>
    %67 = vector.extract_strided_slice %30 {offsets = [0, 4], sizes = [8, 1], strides = [1, 1]} : vector<8x8xf32> to vector<8x1xf32>
    %cst_20 = arith.constant 0.000000e+00 : f32
    %68 = vector.shape_cast %67 : vector<8x1xf32> to vector<8x1xf32>
    %69 = vector.broadcast %68 : vector<8x1xf32> to vector<8x8xf32>
    %70 = vector.broadcast %cst_20 : f32 to vector<8x8xf32>
    %71 = arith.select %66, %69, %70 : vector<8x8xi1>, vector<8x8xf32>
    %72 = arith.addf %64, %71 : vector<8x8xf32>
    %c5_i32 = arith.constant 5 : i32
    %73 = vector.broadcast %c5_i32 : i32 to vector<8x8xi32>
    %74 = arith.cmpi eq, %31, %73 : vector<8x8xi32>
    %75 = vector.extract_strided_slice %30 {offsets = [0, 5], sizes = [8, 1], strides = [1, 1]} : vector<8x8xf32> to vector<8x1xf32>
    %cst_21 = arith.constant 0.000000e+00 : f32
    %76 = vector.shape_cast %75 : vector<8x1xf32> to vector<8x1xf32>
    %77 = vector.broadcast %76 : vector<8x1xf32> to vector<8x8xf32>
    %78 = vector.broadcast %cst_21 : f32 to vector<8x8xf32>
    %79 = arith.select %74, %77, %78 : vector<8x8xi1>, vector<8x8xf32>
    %80 = arith.addf %72, %79 : vector<8x8xf32>
    %c6_i32 = arith.constant 6 : i32
    %81 = vector.broadcast %c6_i32 : i32 to vector<8x8xi32>
    %82 = arith.cmpi eq, %31, %81 : vector<8x8xi32>
    %83 = vector.extract_strided_slice %30 {offsets = [0, 6], sizes = [8, 1], strides = [1, 1]} : vector<8x8xf32> to vector<8x1xf32>
    %cst_22 = arith.constant 0.000000e+00 : f32
    %84 = vector.shape_cast %83 : vector<8x1xf32> to vector<8x1xf32>
    %85 = vector.broadcast %84 : vector<8x1xf32> to vector<8x8xf32>
    %86 = vector.broadcast %cst_22 : f32 to vector<8x8xf32>
    %87 = arith.select %82, %85, %86 : vector<8x8xi1>, vector<8x8xf32>
    %88 = arith.addf %80, %87 : vector<8x8xf32>
    %c7_i32 = arith.constant 7 : i32
    %89 = vector.broadcast %c7_i32 : i32 to vector<8x8xi32>
    %90 = arith.cmpi eq, %31, %89 : vector<8x8xi32>
    %91 = vector.extract_strided_slice %30 {offsets = [0, 7], sizes = [8, 1], strides = [1, 1]} : vector<8x8xf32> to vector<8x1xf32>
    %cst_23 = arith.constant 0.000000e+00 : f32
    %92 = vector.shape_cast %91 : vector<8x1xf32> to vector<8x1xf32>
    %93 = vector.broadcast %92 : vector<8x1xf32> to vector<8x8xf32>
    %94 = vector.broadcast %cst_23 : f32 to vector<8x8xf32>
    %95 = arith.select %90, %93, %94 : vector<8x8xi1>, vector<8x8xf32>
    %96 = arith.addf %88, %95 : vector<8x8xf32>
    %97 = arith.addf %27, %96 : vector<8x8xf32>
    %cst_24 = arith.constant dense<0.000000e+00> : vector<8x32xf32>
    %98 = tpu.matmul %97, %9, %cst_24 {dimension_numbers = #tpu.dot_dimension_numbers<[1], [0], [0], [1], [0, 0, 1, 1], [], []>} : vector<8x8xf32>, vector<8x32xf32>, vector<8x32xf32> -> vector<8x32xf32>
    %c0_25 = arith.constant 0 : index
    %c0_26 = arith.constant 0 : index
    %99 = vector.load %arg6[%c0_25, %c0_26] : memref<32x32xf32, #tpu.memory_space<vmem>>, vector<32x32xf32>
    %cst_27 = arith.constant dense<0.000000e+00> : vector<8x32xf32>
    %100 = tpu.matmul %98, %99, %cst_27 {dimension_numbers = #tpu.dot_dimension_numbers<[1], [0], [0], [1], [0, 0, 1, 1], [], []>} : vector<8x32xf32>, vector<32x32xf32>, vector<8x32xf32> -> vector<8x32xf32>
    %c0_28 = arith.constant 0 : index
    %c0_29 = arith.constant 0 : index
    %101 = vector.load %arg7[%c0_28, %c0_29] : memref<1x32xf32, #tpu.memory_space<vmem>>, vector<1x32xf32>
    %102 = vector.broadcast %101 : vector<1x32xf32> to vector<8x32xf32>
    %103 = arith.addf %100, %102 : vector<8x32xf32>
    %104 = arith.addf %103, %1 : vector<8x32xf32>
    %c0_30 = arith.constant 0 : index
    %c0_31 = arith.constant 0 : index
    %c0_32 = arith.constant 0 : index
    %105 = vector.load %arg8[%c0_30, %c0_31, %c0_32] : memref<1x8x32xf32, #tpu.memory_space<vmem>>, vector<1x8x32xf32>
    %106 = vector.shape_cast %105 : vector<1x8x32xf32> to vector<8x32xf32>
    %107 = vector.shape_cast %104 : vector<8x32xf32> to vector<1x8x32xf32>
    tpu.vector_store %arg8[%c0_30, %c0_31, %c0_32], %107 {strides = array<i32>} : memref<1x8x32xf32, #tpu.memory_space<vmem>>, vector<1x8x32xf32>,
    %cst_33 = arith.constant dense<0.000000e+00> : vector<8xf32>
    %108 = vector.multi_reduction <add>, %104, %cst_33 [1] : vector<8x32xf32> to vector<8xf32>
    %109 = vector.shape_cast %108 : vector<8xf32> to vector<8x1xf32>
    %110 = arith.mulf %104, %104 : vector<8x32xf32>
    %cst_34 = arith.constant dense<0.000000e+00> : vector<8xf32>
    %111 = vector.multi_reduction <add>, %110, %cst_34 [1] : vector<8x32xf32> to vector<8xf32>
    %112 = vector.shape_cast %111 : vector<8xf32> to vector<8x1xf32>
    %113 = tpu.concatenate %109, %112 in 1 : vector<8x1xf32>, vector<8x1xf32> -> vector<8x2xf32>
    %c0_35 = arith.constant 0 : index
    %c0_36 = arith.constant 0 : index
    %c0_37 = arith.constant 0 : index
    %114 = vector.load %arg9[%c0_35, %c0_36, %c0_37] : memref<1x8x2xf32, #tpu.memory_space<vmem>>, vector<1x8x2xf32>
    %115 = vector.shape_cast %114 : vector<1x8x2xf32> to vector<8x2xf32>
    %116 = vector.shape_cast %113 : vector<8x2xf32> to vector<1x8x2xf32>
    tpu.vector_store %arg9[%c0_35, %c0_36, %c0_37], %116 {strides = array<i32>} : memref<1x8x2xf32, #tpu.memory_space<vmem>>, vector<1x8x2xf32>,
    return
  }
  func.func @transform_0(%arg0: i32, %arg1: i32) -> (i32, i32, i32) {
    %c0_i32 = arith.constant 0 : i32
    %c0_i32_0 = arith.constant 0 : i32
    return %arg0, %arg1, %c0_i32 : i32, i32, i32
  }
  func.func @transform_1(%arg0: i32, %arg1: i32) -> (i32, i32) {
    %c0_i32 = arith.constant 0 : i32
    %c0_i32_0 = arith.constant 0 : i32
    %c0_i32_1 = arith.constant 0 : i32
    return %c0_i32, %c0_i32_0 : i32, i32
  }
  func.func @transform_2(%arg0: i32, %arg1: i32) -> (i32, i32) {
    %c0_i32 = arith.constant 0 : i32
    %c0_i32_0 = arith.constant 0 : i32
    %c0_i32_1 = arith.constant 0 : i32
    return %c0_i32, %c0_i32_0 : i32, i32
  }
  func.func @transform_3(%arg0: i32, %arg1: i32) -> (i32, i32, i32) {
    %c0_i32 = arith.constant 0 : i32
    %c0_i32_0 = arith.constant 0 : i32
    %c0_i32_1 = arith.constant 0 : i32
    return %arg1, %c0_i32, %c0_i32_0 : i32, i32, i32
  }
  func.func @transform_4(%arg0: i32, %arg1: i32) -> (i32, i32) {
    %c0_i32 = arith.constant 0 : i32
    %c0_i32_0 = arith.constant 0 : i32
    %c0_i32_1 = arith.constant 0 : i32
    return %c0_i32, %c0_i32_0 : i32, i32
  }
  func.func @transform_5(%arg0: i32, %arg1: i32) -> (i32, i32) {
    %c0_i32 = arith.constant 0 : i32
    %c0_i32_0 = arith.constant 0 : i32
    %c0_i32_1 = arith.constant 0 : i32
    return %c0_i32, %c0_i32_0 : i32, i32
  }
  func.func @transform_6(%arg0: i32, %arg1: i32) -> (i32, i32, i32) {
    %c0_i32 = arith.constant 0 : i32
    %c0_i32_0 = arith.constant 0 : i32
    return %arg0, %arg1, %c0_i32 : i32, i32, i32
  }
  func.func @transform_7(%arg0: i32, %arg1: i32) -> (i32, i32, i32) {
    %c0_i32 = arith.constant 0 : i32
    %c0_i32_0 = arith.constant 0 : i32
    return %arg0, %arg1, %c0_i32 : i32, i32, i32
  }
}

</mosaic_0001>

<bundles_post_ra>
// kernel: tpu_custom_call.1
= control target key start
LH: loop header
LB: loop body
LE: loop exit
PB: predicated region body
PF: predicated region fallthrough
CT: control target
= control target key end

     0   :  { %s2051_s0 = inlined_call_operand.hbm [shape: f32[2,32,32], index: 0, kind: input, shape index: {}]   ;;  %s2052_s1 = inlined_call_operand.hbm [shape: f32[32,96], index: 1, kind: input, shape index: {}]   ;;  %s2053_s2 = inlined_call_operand.vmem [shape: f32[1,96], index: 2, kind: input, shape index: {}]   ;;  %s2054_s3 = inlined_call_operand.hbm [shape: f32[4,8,32], index: 3, kind: input, shape index: {}]   ;;  %s2055_s4 = inlined_call_operand.hbm [shape: f32[32,32], index: 4, kind: input, shape index: {}]   ;;  %s2056_s5 = inlined_call_operand.vmem [shape: f32[1,32], index: 5, kind: input, shape index: {}]   ;;  %s2057_s6 = inlined_call_operand.hbm [shape: f32[2,32,32], index: 6, kind: output, shape index: {0}]   ;;  %s2058_s7 = inlined_call_operand.vmem [shape: f32[2,32,2], index: 7, kind: output, shape index: {1}]  }
   0x1   :  { %2077 = sst [smem:[#allocation21_spill]] %s2052_s1 }
   0x2   :  { %2078 = sst [smem:[#allocation22_spill]] %s2053_s2 }
   0x3   :  { %2079 = sst [smem:[#allocation23_spill]] %s2056_s5 }
   0x4   :  { %2080 = sst [smem:[#allocation24_spill]] %s2057_s6 }
   0x5   :  { %2081 = sst [smem:[#allocation25_spill]] %s2058_s7 }
   0x6   :  { %13 = vsyncpa [#allocation3], 0 }
   0x7   :  { %15 = vsyncpa [#allocation3 + $0x1], 0 }
   0x8   :  { %16 = vsyncpa [#allocation6], 0 }
   0x9   :  { %17 = vsyncpa [#allocation4], 0 }
   0xa   :  { %19 = vsyncpa [#allocation4 + $0x1], 0  ;;  %s1637_s24 = smov 0   ;;  %s1639_s25 = smov 0  }
   0xb   :  { %s1641_s26 = smov 0   ;;  %s1643_s27 = smov 0  }
   0xc   :  { %s1645_s28 = smov 0   ;;  %s1647_s29 = smov 0  }
   0xd   :  { %s1649_s30 = smov 0   ;;  %s1651_s8 = smov 0  }
   0xe   :  { %s1653_s9 = smov 0   ;;  %s1655_s10 = smov 0  }
   0xf   :  { %s1657_s11 = smov 0  }
  0x10 LB: > { %2082 = sst [smem:[#allocation15_spill]] %s1547_s27  ;;  %s1693_s12 = sadd.s32 4294967295, %s1575_s11   ;;  %s1575_s11 = sphi %s1657_s11, %s25_s11   ;;  %s1571_s10 = sphi %s1655_s10, %s2135_s10   ;;  %s1567_s9 = sphi %s1653_s9, %s2134_s9   ;;  %s1563_s8 = sphi %s1651_s8, %s2133_s8   ;;  %s1559_s30 = sphi %s1649_s30, %s2132_s30   ;;  %s1555_s29 = sphi %s1647_s29, %s2131_s29   ;;  %s1551_s28 = sphi %s1645_s28, %s2130_s28   ;;  %s1547_s27 = sphi %s1643_s27, %s2129_s27   ;;  %s1543_s26 = sphi %s1641_s26, %s2128_s26   ;;  %s1539_s25 = sphi %s1639_s25, %s2127_s25   ;;  %s1535_s24 = sphi %s1637_s24, %s2126_s24  }
  0x11   : > { %2083 = sst [smem:[#allocation16_spill]] %s1559_s30  ;;  %p1073_p0 = scmp.ge.s32.totalorder %s1575_s11, 1 }
  0x12   : > { %2084 = sst [smem:[#allocation17_spill]] %s1563_s8  ;;  %p2059_p1 = scmp.eq.s32.totalorder %s1693_s12, 0 }
  0x13   : > { %p236_p2 = scmp.lt.s32.totalorder %s1575_s11, 9  ;;  %s1577_s14 = smov [#allocation5]  }
  0x14   : > { %s248_s15 = sshll.u32 %s1577_s14, 4  ;;  %s2087_s1 = sld [smem:[#allocation21_spill]]  ;;  %s249_s15 = int_to_ptr.vmem [resolvable:$true] %s248_s15 }
  0x15   : > { %p1698_p3 = pnand %p1073_p0, %p236_p2 }
  0x17   : > { %s2085_s13 = scalar_select %p1698_p3, 1, 0 }
  0x18   : > { %p1183_p4 = pneg %p1698_p3 }
  0x1a   : > { %p1706_p5 = pnand %p1183_p4, %p2059_p1  ;;  %s1325_s19 = scalar_lea.hbm %s2087_s1, 512 }
  0x1b   : > { %p1326_p6 = scmp.ne.s32.totalorder %s2087_s1, %s1325_s19  ;;  %p1332_p10 = scmp.lt.u32.totalorder %s1325_s19, %s2087_s1 }
  0x1c   : > { %p2073_p7 = pneg %p1706_p5 }
  0x1e   : > { %p1328_p8 = pnand %p2073_p7, %p1326_p6 }
  0x20   : > { %p1329_p9 = pneg %p1328_p8 }
  0x22   : > { %p1334_p11 = pnand %p1332_p10, %p1329_p9 }
  0x24   : > { %1337 = shalt.err (!%p1334_p11)
}
  0x25   : > { %s1338_s14 = scalar_lea.vmem %s249_s15, 512  ;;  %p1346_p2 = scmp.lt.s32.totalorder %s249_s15, %s249_s15 }
  0x26   : > { %p1339_p12 = scmp.ne.s32.totalorder %s249_s15, %s1338_s14  ;;  %p1347_p4 = scmp.lt.s32.totalorder %s1338_s14, %s1338_s14 }
  0x28   : > { %p1341_p13 = pnand %p1339_p12, %p2073_p7  ;;  %p1348_p1 = por %p1347_p4, %p1346_p2 }
  0x2a   : > { %p1342_p0 = pneg %p1341_p13 }
  0x2c   : > { %p1349_p3 = pnand %p1348_p1, %p1342_p0 }
  0x2e   : > { %1352 = shalt.err (!%p1349_p3)
}
  0x2f   : > { %s2061_s17 = smov 128   ;;  %s2062_s18 = smov 8  }
  0x30   : > { %1186 = dma.hbm_to_vmem [thread:$0]  (!%p1706_p5), %s2087_s1, 512, %s249_s15, [#allocation6], %s2061_s17, %s2061_s17, %s2062_s18  }
  0x31   : > { %s1072_s21 = sadd.s32 4294967294, %s1575_s11   ;;  %s34_s22 = sadd.s32 1, %s1567_s9 }
  0x32   : > { %s37_s23 = sadd.s32 1, %s1571_s10  ;;  %p35_p1 = scmp.ge.s32.totalorder %s34_s22, 4 }
  0x33   : > { %s46_s14 = sadd.s32 1, %s1555_s29  ;;  %p53_p3 = scmp.ne.s32.totalorder %s1555_s29, %s1551_s28 }
  0x34   : > { %p2063_p6 = scmp.eq.s32.totalorder %s1575_s11, 0  ;;  %s2137_s22 = smov (%p35_p1, %s34_s22), 0 }
  0x35   : > { %2088 = sst [smem:[#allocation18_spill]] %s2137_s22  ;;  %s2139_s23 = smov (!%p35_p1, %s37_s23), %s1571_s10 }
  0x36   : > { %s1747_s7 = ssub.s32 %s1567_s9, %s2137_s22  ;;  %p1751_p8 = por %p2063_p6, %p53_p3 }
  0x37   : > { %p39_p9 = scmp.ge.s32.totalorder %s2139_s23, 2  ;;  %p59_p10 = scmp.ne.s32.totalorder %s1551_s28, %s1547_s27 }
  0x38   : > { %p195_p12 = scmp.eq.s32.totalorder %s1693_s12, 7  ;;  %p2091_p13 = scmp.eq.s32.totalorder %s1693_s12, 0 }
  0x39   : > { %s2141_s23 = smov (%p39_p9, %s2139_s23), 0  ;;  %p201_p4 = scmp.eq.s32.totalorder %s1072_s21, 7 }
  0x3a   : > { %2090 = sst [smem:[#allocation19_spill]] %s2141_s23  ;;  %p1763_p0 = por %p2091_p13, %p59_p10 }
  0x3b   : > { %p1767_p2 = por %p195_p12, %p53_p3  ;;  %s41_s17 = ssub.s32 %s1571_s10, %s2141_s23 }
  0x3c   : > { %s2092_s19 = scalar_select %p1763_p0, 1, 0 }
  0x3d   : > { %s2093_s20 = scalar_select %p1767_p2, 1, 0 }
  0x3e   : > { %s43_s18 = sor.u32 %s1747_s7, %s41_s17  ;;  %p2072_p1 = scmp.lt.s32.totalorder %s1575_s11, 8 }
  0x3f   : > { %2094 = sst [smem:[#allocation20_spill]] %s2093_s20  ;;  %p44_p6 = scmp.eq.s32.totalorder %s43_s18, 0 }
  0x40   : > { %p1775_p11 = por %p201_p4, %p59_p10  ;;  %s281_s22 = sand.u32 1, %s1575_s11  }
  0x41   : > { %s283_s27 = sand.u32 1, %s1555_s29   ;;  %s1078_s30 = sshll.u32 %s1571_s10, 2 }
  0x42   : > { %s2095_s1 = scalar_select %p1775_p11, 1, 0 }
  0x43   : > { %s1782_s6 = scalar_select %p44_p6, %s1555_s29, %s46_s14  }
  0x44   : > { %s1077_s5 = sshll.u32 %s283_s27, 3  ;;  %s290_s8 = sadd.s32 %s1567_s9, %s1078_s30 }
  0x45   : > { %s285_s2 = scalar_lea.vmem [#allocation2], %s1077_s5  ;;  %s1079_s23 = sshll.u32 %s290_s8, 7 }
  0x46   : > { %s294_s20 = sshll.u32 %s285_s2, 4  ;;  %s1791_s18 = scalar_lea.hbm %s2051_s0, %s1079_s23  ;;  %s1786_s20 = int_to_ptr.vmem [resolvable:$true] %s294_s20 }
  0x47   : > { %p1797_p3 = pnand %p2072_p1, %p1751_p8  ;;  %s1580_s2 = smov [#allocation8]  }
  0x48   : > { %s1801_s5 = sshll.u32 %s1580_s2, 4  ;;  %s1803_s30 = scalar_lea.sflag [#allocation3], %s281_s22  ;;  %s265_s5 = int_to_ptr.vmem [resolvable:$true] %s1801_s5 }
  0x49   : > { %s1353_s8 = scalar_lea.hbm %s1791_s18, 128  ;;  %p1355_p9 = pneg %p1797_p3 }
  0x4a   : > { %p1354_p6 = scmp.ne.s32.totalorder %s1791_s18, %s1353_s8  ;;  %s1358_s15 = scalar_lea.hbm %s2051_s0, 1024 }
  0x4b   : > { %p1359_p8 = scmp.lt.u32.totalorder %s1791_s18, %s2051_s0  ;;  %p1360_p13 = scmp.lt.u32.totalorder %s1358_s15, %s1353_s8 }
  0x4c   : > { %p1356_p10 = pnand %p1355_p9, %p1354_p6  ;;  %p1362_p1 = scmp.lt.u32.totalorder %s1353_s8, %s1791_s18 }
  0x4d   : > { %p1361_p4 = por %p1360_p13, %p1359_p8 }
  0x4e   : > { %p1357_p12 = pneg %p1356_p10 }
  0x4f   : > { %p1363_p7 = por %p1362_p1, %p1361_p4 }
  0x51   : > { %p1364_p11 = pnand %p1363_p7, %p1357_p12 }
  0x53   : > { %1367 = shalt.err (!%p1364_p11)
}
  0x54   : > { %s1368_s22 = scalar_lea.vmem %s1786_s20, 128  ;;  %s1581_s2 = smov [#allocation2]  }
  0x55   : > { %p1369_p6 = scmp.ne.s32.totalorder %s1786_s20, %s1368_s22  ;;  %s1373_s23 = sshll.u32 %s1581_s2, 4  ;;  %s1374_s23 = int_to_ptr.vmem [resolvable:$false] %s1373_s23 }
  0x56   : > { %s1375_s14 = scalar_lea.vmem %s1374_s23, 256  ;;  %p1376_p0 = scmp.lt.s32.totalorder %s1786_s20, %s1374_s23 }
  0x57   : > { %p1371_p10 = pnand %p1369_p6, %p1355_p9  ;;  %p1377_p8 = scmp.lt.s32.totalorder %s1375_s14, %s1368_s22 }
  0x59   : > { %p1372_p2 = pneg %p1371_p10  ;;  %p1378_p13 = por %p1377_p8, %p1376_p0 }
  0x5b   : > { %p1379_p1 = pnand %p1378_p13, %p1372_p2 }
  0x5d   : > { %1382 = shalt.err (!%p1379_p1)
}
  0x5e   : > { %1193 = dma.hbm_to_vmem [thread:$0]  (!%p1797_p3), %s1791_s18, 128, %s1786_s20, %s1803_s30  }
  0x5f   : > { %s1383_s21 = scalar_lea.hbm %s2055_s4, 512  ;;  %p2097_p11 = pneg %p1706_p5 }
  0x60   : > { %p1384_p7 = scmp.ne.s32.totalorder %s2055_s4, %s1383_s21  ;;  %p1390_p9 = scmp.lt.u32.totalorder %s1383_s21, %s2055_s4 }
  0x62   : > { %p1386_p0 = pnand %p1384_p7, %p2097_p11 }
  0x64   : > { %p1387_p2 = pneg %p1386_p0 }
  0x66   : > { %p1392_p12 = pnand %p1390_p9, %p1387_p2 }
  0x68   : > { %1395 = shalt.err (!%p1392_p12)
}
  0x69   : > { %s1396_s20 = scalar_lea.vmem %s265_s5, 512  ;;  %p2098_p4 = pmov %p2097_p11 }
  0x6a   : > { %p1397_p3 = scmp.ne.s32.totalorder %s265_s5, %s1396_s20  ;;  %p1404_p8 = scmp.lt.s32.totalorder %s265_s5, %s265_s5 }
  0x6b   : > { %p1405_p13 = scmp.lt.s32.totalorder %s1396_s20, %s1396_s20 }
  0x6c   : > { %p1399_p6 = pnand %p1397_p3, %p2098_p4 }
  0x6d   : > { %p1406_p1 = por %p1405_p13, %p1404_p8 }
  0x6e   : > { %p1400_p10 = pneg %p1399_p6 }
  0x70   : > { %p1407_p7 = pnand %p1406_p1, %p1400_p10 }
  0x72   : > { %1410 = shalt.err (!%p1407_p7)
}
  0x73   : > { %s2099_s18 = smov 8   ;;  %s2100_s23 = smov 128  }
  0x74   : > { %1189 = dma.hbm_to_vmem [thread:$0]  (!%p1706_p5), %s2055_s4, 512, %s265_s5, [#allocation6], %s2100_s23, %s2100_s23, %s2099_s18  }
  0x75   : > { %s114_s16 = sadd.s32 1, %s1543_s26  ;;  %p121_p11 = scmp.ne.s32.totalorder %s1543_s26, %s1539_s25 }
  0x76   : > { %p2101_p0 = scmp.eq.s32.totalorder %s1747_s7, 0  ;;  %p2102_p2 = scmp.eq.s32.totalorder %s1575_s11, 0 }
  0x77   : > { %p127_p12 = scmp.ne.s32.totalorder %s1539_s25, %s1535_s24  ;;  %s303_s21 = sand.u32 1, %s1543_s26  }
  0x78   : > { %s1861_s15 = scalar_select %p2101_p0, %s1543_s26, %s114_s16  }
  0x79   : > { %p123_p9 = por %p121_p11, %p2102_p2  ;;  %s1081_s17 = sshll.u32 %s1567_s9, 7 }
  0x7a   : > { %p2103_p3 = scmp.eq.s32.totalorder %s1693_s12, 0  ;;  %s1080_s27 = sshll.u32 %s303_s21, 3 }
  0x7b   : > { %s1878_s5 = scalar_lea.hbm %s2054_s3, %s1081_s17  ;;  %s305_s7 = scalar_lea.vmem [#allocation7], %s1080_s27 }
  0x7c   : > { %p1871_p4 = por %p127_p12, %p2103_p3  ;;  %s312_s18 = sshll.u32 %s305_s7, 4  ;;  %s313_s18 = int_to_ptr.vmem [resolvable:$true] %s312_s18 }
  0x7d   : > { %p2105_p5 = scmp.lt.s32.totalorder %s1575_s11, 8  ;;  %s1411_s23 = scalar_lea.hbm %s1878_s5, 128 }
  0x7e   : > { %s2104_s2 = scalar_select %p1871_p4, 1, 0 }
  0x7f   : > { %p1882_p6 = pnand %p2105_p5, %p123_p9  ;;  %p1412_p10 = scmp.ne.s32.totalorder %s1878_s5, %s1411_s23 }
  0x80   : > { %s1416_s16 = scalar_lea.hbm %s2054_s3, 512  ;;  %p1417_p7 = scmp.lt.u32.totalorder %s1878_s5, %s2054_s3 }
  0x81   : > { %p1413_p8 = pneg %p1882_p6  ;;  %p1418_p11 = scmp.lt.u32.totalorder %s1416_s16, %s1411_s23 }
  0x82   : > { %p1420_p2 = scmp.lt.u32.totalorder %s1411_s23, %s1878_s5 }
  0x83   : > { %p1414_p13 = pnand %p1413_p8, %p1412_p10  ;;  %p1419_p0 = por %p1418_p11, %p1417_p7 }
  0x85   : > { %p1415_p1 = pneg %p1414_p13  ;;  %p1421_p9 = por %p1420_p2, %p1419_p0 }
  0x87   : > { %p1422_p12 = pnand %p1421_p9, %p1415_p1 }
  0x89   : > { %1425 = shalt.err (!%p1422_p12)
}
  0x8a   : > { %s1426_s27 = scalar_lea.vmem %s313_s18, 128  ;;  %s1582_s22 = smov [#allocation7]  }
  0x8b   : > { %p1427_p3 = scmp.ne.s32.totalorder %s313_s18, %s1426_s27  ;;  %s1431_s20 = sshll.u32 %s1582_s22, 4  ;;  %s1432_s20 = int_to_ptr.vmem [resolvable:$false] %s1431_s20 }
  0x8c   : > { %s1433_s7 = scalar_lea.vmem %s1432_s20, 256  ;;  %p1434_p13 = scmp.lt.s32.totalorder %s313_s18, %s1432_s20 }
  0x8d   : > { %p1429_p5 = pnand %p1427_p3, %p1413_p8  ;;  %p1435_p4 = scmp.lt.s32.totalorder %s1433_s7, %s1426_s27 }
  0x8f   : > { %p1430_p10 = pneg %p1429_p5  ;;  %p1436_p7 = por %p1435_p4, %p1434_p13 }
  0x91   : > { %p1437_p11 = pnand %p1436_p7, %p1430_p10 }
  0x93   : > { %1440 = shalt.err (!%p1437_p11)
}
  0x94   : > { %1196 = dma.hbm_to_vmem [thread:$0]  (!%p1882_p6), %s1878_s5, 128, %s313_s18, %s1803_s30  }
  0x95   : > { %p2107_p1 = scmp.ne.s32.totalorder %s2085_s13, 0 }
  0x96   : > { %s323_s23 = sand.u32 (!%p2107_p1), 1, %s1693_s12   ;;  %s325_s14 = sand.u32 (!%p2107_p1), 1, %s1551_s28  }
  0x97   : > { %321 = sbr.rel (%p2107_p1) target bundleno = 1617 (0x651), region = 44  ;;  %s1914_s8 = sshll.u32 (!%p2107_p1), %s325_s14, 3 }
  0x98   : > { %s324_s16 = scalar_lea.sflag (!%p2107_p1), [#allocation3], %s323_s23  ;;  %s327_s21 = scalar_lea.vmem (!%p2107_p1), [#allocation2], %s1914_s8 }
  0x99   : > { %p2108_p4 = scmp.ne.s32.totalorder (!%p2107_p1), %s2092_s19, 0 }
  0x9e   : > { %1514 = dma.done.wait (%p2108_p4), %s324_s16, 128  }
  0x9f   : > { %1516 = vsyncadd (%p2108_p4), %s324_s16, 4294967168  ;;  %p2109_p6 = scmp.eq.s32.totalorder %s1693_s12, 0 }
  0xa1   : > { %1518 = dma.done.wait (%p2109_p6), [#allocation6], 512   ;;  %p2110_p8 = pmov %p2109_p6 }
  0xa2   : > { %s338_s13 = sand.u32 1, %s1539_s25   ;;  %p2111_p0 = scmp.ne.s32.totalorder %s2104_s2, 0 }
  0xa3   : > { %1520 = vsyncadd (%p2110_p8), [#allocation6], 4294966784  ;;  %s1926_s30 = sshll.u32 %s338_s13, 3 }
  0xa4   : > { %s340_s5 = scalar_lea.vmem [#allocation7], %s1926_s30 }
  0xa5   : > { %1522 = dma.done.wait (%p2111_p0), %s324_s16, 128  }
  0xa6   : > { %1524 = vsyncadd (%p2111_p0), %s324_s16, 4294967168  ;;  %p2112_p2 = pmov %p2109_p6 }
  0xa8   : > { %1526 = dma.done.wait (%p2112_p2), [#allocation6], 512   ;;  %p2113_p9 = pmov %p2112_p2 }
  0xa9   : > { %v1583_v0 = vmov 0.0|0.0   ;;  %vm1584_vm0 = vmmov 0   ;;  %v1585_v1 = vmov 0.0   ;;  %v397_v2 = vld [vmem:[#allocation5] sm:$0xff]  ;;  %v398_v3 = vld [vmem:[#allocation5 + $0x8] sm:$0xff]  ;;  %v399_v4 = vld [vmem:[#allocation5 + $0x10] sm:$0xff]  ;;  %v559_v15 = vlaneseq }
  0xaa   : > { %1528 = vsyncadd (%p2113_p9), [#allocation6], 4294966784  ;;  %1157 = vmatprep.subr.bf16.mxu0 %v1583_v0  ;;  %1128 = vmatprep.mubr.msk.f32.mxu0 %vm1584_vm0, %v1585_v1  ;;  %v1158_v5 = vpack.c.bf16 %v398_v3, %v397_v2  ;;  %v400_v6 = vld [vmem:[#allocation5 + $0x18] sm:$0xff]  ;;  %vm408_vm1 = vcmask 261120   ;;  %s2114_s2 = sld [smem:[#allocation22_spill]]  ;;  %s1586_s18 = smov 96  }
  0xab   : > { %1131 = vmatprep.subr.mxu1 %v1585_v1  ;;  %1133 = vmatprep.mubr.msk.f32.mxu1 %vm1584_vm0, %v1585_v1  ;;  %v1161_v7 = vpack.c.bf16 %v400_v6, %v399_v4  ;;  %v1941_v8 = vld [vmem:[%s327_s21] sm:$0xff]  ;;  %v578_v14 = vld [vmem:[%s340_s5] sm:$0xff]  ;;  %v560_v16 = vshrl.u32 %v559_v15, 7  ;;  %v562_v17 = vand.u32 127, %v559_v15  ;;  %v1587_v19 = vmov 0   ;;  %s1595_s24 = smov 64  }
  0xac   : > { %1159 = vmatpush3.bf16.msra.mxu0 %v1158_v5  ;;  %1312 = vset.pattern.permute.xlu1 %v1587_v19  ;;  %v1588_v20 = vmov 5   ;;  %vm566_vm3 = vcmask 64512   ;;  %v1589_v28 = vmov 1   ;;  %v1590_v29 = vmov 2   ;;  %v787_v39 = vld [vmem:[#allocation8] sm:$0xff]  ;;  %v788_v40 = vld [vmem:[#allocation8 + $0x8] sm:$0xff] }
  0xad   : > { %1160 = vmatprep.subr.bf16.mxu0 %v1583_v0  ;;  %v1958_v18 = vsub.s32 %v560_v16, %v562_v17  ;;  %1317 = vset.pattern.permute.xlu0 %v1588_v20  ;;  %vm563_vm2 = vcmp.gt.s32.totalorder %v562_v17, %v560_v16  ;;  %v1591_v30 = vmov 3   ;;  %v1592_v31 = vmov 4   ;;  %v789_v41 = vld [vmem:[#allocation8 + $0x10] sm:$0xff]  ;;  %v790_v43 = vld [vmem:[#allocation8 + $0x18] sm:$0xff]  ;;  %s2115_s17 = sld [smem:[#allocation17_spill]]  ;;  %s2116_s27 = sld [smem:[#allocation16_spill]] }
  0xae   : > { %v1593_v32 = vmov 6   ;;  %v1594_v33 = vmov 7   ;;  %v1164_v42 = vpack.c.bf16 %v788_v40, %v787_v39  ;;  %v1167_v44 = vpack.c.bf16 %v790_v43, %v789_v41  ;;  %s2117_s7 = sld [smem:[#allocation23_spill]]  ;;  %s377_s16 = scalar_lea.vmem [#allocation9], %s1914_s8 }
  0xaf   : > { %vm661_vm4 = vcmp.eq.s32.totalorder %v1958_v18, 1  ;;  %vm653_vm5 = vcmp.eq.s32.totalorder %v1958_v18, 0  ;;  %vm668_vm6 = vcmp.eq.s32.totalorder %v1958_v18, 2  ;;  %vm675_vm7 = vcmp.eq.s32.totalorder %v1958_v18, 3  ;;  %s2118_s23 = sld [smem:[#allocation20_spill]]  ;;  %s2119_s19 = sld [smem:[#allocation24_spill]] }
  0xb0   : > { %1162 = vmatpush3.bf16.msra.mxu0 %v1161_v7  ;;  %v1090_v9 = vld [vmem:[%s2114_s2] ss:$0 sm:$0xff]  ;;  %vm682_vm8 = vcmp.eq.s32.totalorder %v1958_v18, 4  ;;  %vm689_vm9 = vcmp.eq.s32.totalorder %v1958_v18, 5  ;;  %vm696_vm10 = vcmp.eq.s32.totalorder %v1958_v18, 6  ;;  %vm703_vm11 = vcmp.eq.s32.totalorder %v1958_v18, 7 }
  0xb1   : > { %1141 = vmatprep.subr.mxu0 %v1585_v1  ;;  %s1596_s8 = smov [#allocation9]  }
  0xb2   : > { %s1445_s20 = sshll.u32 %s1596_s8, 4  ;;  %s1446_s20 = int_to_ptr.vmem [resolvable:$false] %s1445_s20 }
  0xb3   : > { %1129 = vmatmul.mubr.msk.f32.vlgmr.msra.gmra.mrb[0].mxu0 %vm408_vm1, %v1941_v8  ;;  %s1100_s21 = sshll.u32 %s2115_s17, 2 }
  0xb4   : > { %1143 = vmatprep.mubr.msk.f32.mxu0 %vm1584_vm0, %v1585_v1  ;;  %s904_s13 = sadd.s32 %s2116_s27, %s1100_s21 }
  0xb5   : > { %s1101_s30 = sshll.u32 %s904_s13, 7  ;;  %p2120_p3 = scmp.ne.s32.totalorder %s2118_s23, 0 }
  0xb6   : > { %s1986_s2 = scalar_lea.hbm %s2119_s19, %s1101_s30 }
 0x186   : > { %v478_v10 = vpop.f32.mrb[0].mxu0 }
 0x187   : > { %v479_v11 = vadd.f32 %v1090_v9, %v478_v10  ;;  %v1130_v12 = vpop.f32.mrb[1].mxu0 }
 0x188   : > { %v1097_v12 = vld [vmem:[%s2117_s7] ss:$0 sm:$0xff]  ;;  %s1447_s7 = scalar_lea.vmem %s1446_s20, 256 }
 0x189   : > { %483 = vrot.lane.b32.xlu0 %v479_v11, %s1586_s18  ;;  %s908_s18 = sshll.u32 %s377_s16, 4  ;;  %s909_s18 = int_to_ptr.vmem [resolvable:$true] %s908_s18 }
 0x18a   : > { %s1441_s22 = scalar_lea.vmem %s909_s18, 128  ;;  %p1448_p13 = scmp.lt.s32.totalorder %s909_s18, %s1446_s20 }
 0x18b   : > { %p1442_p12 = scmp.ne.s32.totalorder %s909_s18, %s1441_s22  ;;  %p1449_p7 = scmp.lt.s32.totalorder %s1447_s7, %s1441_s22 }
 0x18d   : > { %p1443_p5 = pnand %p1442_p12, %p2120_p3  ;;  %p1450_p11 = por %p1449_p7, %p1448_p13 }
 0x18f   : > { %p1444_p10 = pneg %p1443_p5 }
 0x191   : > { %p1451_p1 = pnand %p1450_p11, %p1444_p10 }
 0x1fb   : > { %v484_v13 = vpop.permute.xlu0 %483 }
 0x1fc   : > { %1132 = vmatpush3.xpose.msk.msra.mxu1 %vm408_vm1, %v484_v13 }
 0x1fd   : > { %1136 = vmatprep.subr.mxu1 %v1585_v1 }
 0x1ff   : > { %1134 = vmatmul.mubr.msk.f32.vlgmr.msra.gmra.mrb[0].mxu1 %vm408_vm1, %v479_v11 }
 0x200   : > { %1137 = vmatpush3.xpose.msk.msra.mxu1 %vm408_vm1, %v578_v14  ;;  %1138 = vmatprep.mubr.msk.f32.mxu1 %vm1584_vm0, %v1585_v1 }
 0x201   : > { %1163 = vmatprep.subr.bf16.mxu1 %v1583_v0 }
 0x203   : > { %1139 = vmatmul.mubr.msk.f32.vlgmr.msra.gmra.mrb[2].mxu1 %vm408_vm1, %v479_v11 }
 0x204   : > { %1154 = vmatprep.mubr.msk.f32.mxu1 %vm1584_vm0, %v1585_v1  ;;  %1165 = vmatpush3.bf16.msra.mxu1 %v1164_v42 }
 0x205   : > { %1166 = vmatprep.subr.bf16.mxu1 %v1583_v0 }
 0x208   : > { %1168 = vmatpush3.bf16.msra.mxu1 %v1167_v44 }
 0x2d2   : > { %v555_v21 = vpop.f32.mrb[0].mxu1 }
 0x2d3   : > { %v564_v22 = vsel %vm563_vm2, %v555_v21, -1e+20  ;;  %v1135_v23 = vpop.f32.mrb[1].mxu1 }
 0x2d4   : > { %v565_v24 = vmul.f32 0.17677669, %v564_v22 }
 0x2d6   : > { %v648_v25 = vpop.f32.mrb[2].mxu1  ;;  %v567_v26 = vsel %vm566_vm3, %v565_v24, -inf }
 0x2d7   : > { %568 = vmax.xlane.f32.xlu0 %v567_v26  ;;  %656 = vperm.xlu1 %1312, %v648_v25   ;;  %v1140_v27 = vpop.f32.mrb[3].mxu1 }
 0x2db   : > { %1313 = vset.pattern.permute.xlu1 %v1589_v28 }
 0x2dc   : > { %663 = vperm.xlu1 %1313, %v648_v25  }
 0x2e0   : > { %1314 = vset.pattern.permute.xlu1 %v1590_v29 }
 0x2e1   : > { %670 = vperm.xlu1 %1314, %v648_v25  }
 0x2e5   : > { %1315 = vset.pattern.permute.xlu1 %v1591_v30 }
 0x2e6   : > { %677 = vperm.xlu1 %1315, %v648_v25  }
 0x2ea   : > { %1316 = vset.pattern.permute.xlu1 %v1592_v31 }
 0x2eb   : > { %684 = vperm.xlu1 %1316, %v648_v25  }
 0x2ed   : > { %691 = vperm.xlu0 %1317, %v648_v25  }
 0x2ef   : > { %1318 = vset.pattern.permute.xlu1 %v1593_v32 }
 0x2f0   : > { %698 = vperm.xlu1 %1318, %v648_v25  }
 0x2f1   : > { %1320 = vset.pattern.permute.xlu0 %v1594_v33 }
 0x2f4   : > { %1319 = vset.pattern.permute.xlu1 %v1594_v33 }
 0x2f5   : > { %705 = vperm.xlu1 %1319, %v648_v25  }
 0x356   : > { %v657_v45 = vpop.permute.xlu1 %656 }
 0x357   : > { %v659_v52 = vsel %vm653_vm5, %v657_v45, 0.0 }
 0x35b   : > { %v664_v46 = vpop.permute.xlu1 %663 }
 0x35c   : > { %v666_v51 = vsel %vm661_vm4, %v664_v46, 0.0 }
 0x35d   : > { %v667_v54 = vadd.f32 %v666_v51, %v659_v52 }
 0x360   : > { %v671_v47 = vpop.permute.xlu1 %670 }
 0x361   : > { %v673_v53 = vsel %vm668_vm6, %v671_v47, 0.0 }
 0x362   : > { %v674_v57 = vadd.f32 %v673_v53, %v667_v54 }
 0x364   : > { %v569_v34 = vpop.xlane.xlu0 %568 }
 0x365   : > { %v570_v35 = vsub.f32 %v565_v24, %v569_v34  ;;  %v678_v48 = vpop.permute.xlu1 %677 }
 0x366   : > { %v680_v56 = vsel %vm675_vm7, %v678_v48, 0.0 }
 0x367   : > { %v571_v36 = vmul.f32 1.442695, %v570_v35  ;;  %v681_v59 = vadd.f32 %v680_v56, %v674_v57 }
 0x369   : > { %1321 = vpow2.f32 %v571_v36 }
 0x36a   : > { %v685_v49 = vpop.permute.xlu1 %684 }
 0x36b   : > { %v687_v58 = vsel %vm682_vm8, %v685_v49, 0.0 }
 0x36c   : > { %v692_v60 = vpop.permute.xlu0 %691  ;;  %v688_v62 = vadd.f32 %v687_v58, %v681_v59 }
 0x36d   : > { %v694_v63 = vsel %vm689_vm9, %v692_v60, 0.0 }
 0x36e   : > { %v695_v1 = vadd.f32 %v694_v63, %v688_v62 }
 0x36f   : > { %v699_v50 = vpop.permute.xlu1 %698 }
 0x370   : > { %v701_v2 = vsel %vm696_vm10, %v699_v50, 0.0 }
 0x371   : > { %v702_v4 = vadd.f32 %v701_v2, %v695_v1 }
 0x373   : > { %v1322_v37 = vpop.eup %1321 }
 0x374   : > { %v573_v38 = vsel %vm566_vm3, %v1322_v37, 0.0  ;;  %v706_v55 = vpop.permute.xlu1 %705 }
 0x375   : > { %574 = vadd.xlane.f32.xlu1 %v573_v38  ;;  %v708_v3 = vsel %vm703_vm11, %v706_v55, 0.0 }
 0x376   : > { %v709_v6 = vadd.f32 %v708_v3, %v702_v4 }
 0x386   : > { %711 = vrot.lane.b32.xlu1 %v479_v11, %s1595_s24  ;;  %s885_s24 = scalar_lea.sflag [#allocation4], %s325_s14 }
 0x402   : > { %v575_v61 = vpop.xlane.xlu1 %574 }
 0x403   : > { %1323 = vrcp.f32 %v575_v61 }
 0x406   : > { %v712_v0 = vpop.permute.xlu1 %711 }
 0x407   : > { %1142 = vmatpush3.msra.mxu0 %v712_v0 }
 0x40d   : > { %v1324_v5 = vpop.eup %1323 }
 0x40e   : > { %v577_v7 = vmul.f32 %v1324_v5, %v1322_v37 }
 0x410   : > { %v710_v9 = vadd.f32 %v709_v6, %v577_v7 }
 0x412   : > { %1144 = vmatmul.mubr.msk.f32.vlgmr.msra.gmra.mrb[2].mxu0 %vm566_vm3, %v710_v9 }
 0x4e5   : > { %v783_v10 = vpop.f32.mrb[2].mxu0 }
 0x4e6   : > { %v1145_v11 = vpop.f32.mrb[3].mxu0  ;;  %1155 = vmatmul.mubr.msk.f32.vlgmr.msra.gmra.mrb[4].mxu1 %vm408_vm1, %v783_v10 }
 0x5b9   : > { %v867_v13 = vpop.f32.mrb[4].mxu1 }
 0x5ba   : > { %v868_v14 = vadd.f32 %v1097_v12, %v867_v13  ;;  %v1156_v15 = vpop.f32.mrb[5].mxu1 }
 0x5bc   : > { %v871_v16 = vadd.f32 %v868_v14, %v1941_v8 }
 0x5be   : > { %v873_v17 = vsel %vm408_vm1, %v871_v16, 0.0  ;;  %v876_v18 = vmul.f32 %v871_v16, %v871_v16  ;;  %872 = vst.msk [vmem:[%s377_s16] sm:$0xff] %vm408_vm1, %v871_v16 }
 0x5bf   : > { %874 = vadd.xlane.f32.xlu1 %v873_v17 }
 0x5c0   : > { %v877_v19 = vsel %vm408_vm1, %v876_v18, 0.0 }
 0x5c1   : > { %878 = vadd.xlane.f32.xlu0 %v877_v19 }
 0x5c2   : > { %1454 = shalt.err (!%p1451_p1)
}
 0x5c3   : > { %s1455_s14 = scalar_lea.hbm %s1986_s2, 128  ;;  %s1459_s13 = scalar_lea.hbm %s2119_s19, 1024 }
 0x5c4   : > { %p1456_p4 = scmp.ne.s32.totalorder %s1986_s2, %s1455_s14  ;;  %p1460_p0 = scmp.lt.u32.totalorder %s1986_s2, %s2119_s19 }
 0x5c5   : > { %p1461_p2 = scmp.lt.u32.totalorder %s1459_s13, %s1455_s14  ;;  %p1463_p12 = scmp.lt.u32.totalorder %s1455_s14, %s1986_s2 }
 0x5c6   : > { %p1457_p6 = pnand %p1456_p4, %p2120_p3 }
 0x5c7   : > { %p1462_p9 = por %p1461_p2, %p1460_p0 }
 0x5c8   : > { %p1458_p8 = pneg %p1457_p6 }
 0x5c9   : > { %p1464_p5 = por %p1463_p12, %p1462_p9 }
 0x5cb   : > { %p1465_p10 = pnand %p1464_p5, %p1458_p8 }
 0x5cd   : > { %1468 = shalt.err (!%p1465_p10)
}
 0x5ce   : > { %1181 = dma.vmem_to_hbm [thread:$0]  (%p2120_p3), %s909_s18, 128, %s1986_s2, %s885_s24   ;;  %vm880_vm12 = vcmask 7168   ;;  %vm882_vm13 = vcmask 15360  }
 0x5cf   : > { %p388_p13 = scmp.lt.s32.totalorder %s2115_s17, 1  ;;  %p390_p7 = scmp.lt.s32.totalorder %s2116_s27, 3 }
 0x5d0   : > { %s2121_s14 = sld [smem:[#allocation25_spill]] }
 0x5d1   : > { %s2143_s17 = smov (!%p388_p13, %s2115_s17), 1  ;;  %s2145_s27 = smov (!%p390_p7, %s2116_s27), 3 }
 0x5d2   : > { %s1088_s12 = sshll.u32 %s2143_s17, 2 }
 0x5d3   : > { %s393_s22 = sadd.s32 %s1088_s12, %s2145_s27 }
 0x5d4   : > { %s1089_s8 = sshll.u32 %s393_s22, 3 }
 0x5d6   : > { %s395_s16 = scalar_lea.vmem %s2121_s14, %s1089_s8 }
 0x64c   : > { %v875_v8 = vpop.xlane.xlu1 %874 }
 0x64e   : > { %v879_v20 = vpop.xlane.xlu0 %878 }
 0x64f   : > { %v881_v21 = vsel %vm880_vm12, %v875_v8, %v879_v20 }
 0x650   : > { %883 = vst.msk [vmem:[%s395_s16] sm:$0xff] %vm882_vm13, %v881_v21 }
 0x651 PF: > { %s2122_s23 = sld [smem:[#allocation15_spill]]  ;;  %p1206_p3 = scmp.ge.s32.totalorder %s1575_s11, 2 }
 0x652   : > { %p2123_p11 = scmp.ne.s32.totalorder %s2095_s1, 0 }
 0x654   : > { %p1198_p1 = pnand %p1206_p3, %p2123_p11 }
 0x657   : > { %s923_s2 = sand.u32 1, %s2122_s23  }
 0x658   : > { %s924_s17 = scalar_lea.sflag [#allocation4], %s923_s2 }
 0x659   : > { %1530 = dma.done.wait (!%p1198_p1), %s924_s17, 128  }
 0x65a   : > { %1532 = vsyncadd (!%p1198_p1), %s924_s17, 4294967168  ;;  %s25_s11 = sadd.s32 1, %s1575_s11   ;;  %s2124_s18 = sld [smem:[#allocation18_spill]] }
 0x65b   : > { %p22_p4 = scmp.ge.s32.totalorder %s25_s11, 10   ;;  %s2125_s21 = sld [smem:[#allocation19_spill]] }
 0x65c   : > { %s2126_s24 = smov %s1539_s25  ;;  %s2127_s25 = smov %s1543_s26 }
 0x65d   : > { %s2128_s26 = smov %s1861_s15  ;;  %s2129_s27 = smov %s1551_s28 }
 0x65e   : > { %s2130_s28 = smov %s1555_s29  ;;  %s2131_s29 = smov %s1782_s6 }
 0x65f   : > { %s2132_s30 = smov %s1567_s9  ;;  %s2133_s8 = smov %s1571_s10 }
 0x660   : > { %s2134_s9 = smov %s2124_s18  ;;  %24 = sbr.rel (!%p22_p4) target bundleno = 16 (0x10), region = 120 }
 0x661   : > { %s2135_s10 = smov %s2125_s21 }
 0x667   :  { %940 = vsyncpa [#allocation3], 1 }
 0x668   :  { %942 = vsyncpa [#allocation3 + $0x1], 1 }
 0x669   :  { %943 = vsyncpa [#allocation6], 1 }
 0x66a   :  { %944 = vsyncpa [#allocation4], 1 }
 0x66b   :  { %946 = vsyncpa [#allocation4 + $0x1], 1 }

</bundles_post_ra>
